<compile_context>
chip_gen: v7x
topology: tpu7x:2x2x1
jax: 0.10.0
libtpu: 0.0.40
codegen_flags: <defaults>
</compile_context>

<pallas_src>
import functools
import inspect

import jax
import jax.numpy as jnp
import numpy as np
from jax.experimental import pallas as pl
from jax.experimental.pallas import tpu as pltpu


def _round_up(x, m):
    return ((x + m - 1) // m) * m


def _pad2(x, shape, dtype=None):
    """Zero-pad a 2-D array up to `shape` (and optionally cast)."""
    r, c = x.shape
    R, C = shape
    out = x if (r, c) == (R, C) else jnp.pad(x, ((0, R - r), (0, C - c)))
    if dtype is not None and out.dtype != dtype:
        out = out.astype(dtype)
    return out


# pipeline_mode / pl.Buffered is present in recent JAX; guard so the kernel
# still compiles on older installs.
_HAS_PIPELINE_MODE = (
    hasattr(pl, "Buffered")
    and "pipeline_mode" in inspect.signature(pl.BlockSpec).parameters
)


def _resident_spec(shape):
    """BlockSpec for a weight/bias that stays VMEM-resident across the grid."""
    ndim = len(shape)
    index_map = lambda r: (0,) * ndim
    if _HAS_PIPELINE_MODE:
        # Constant-index blocks are double-buffered by default; one buffer is
        # enough (they never change) and halves resident weight VMEM on v7x.
        return pl.BlockSpec(shape, index_map, pipeline_mode=pl.Buffered(1))
    return pl.BlockSpec(shape, index_map)


# ----------------------------------------------------------------------------
# Kernel 1: v_r = v_embed(cat([v_g, v_o, relu(fc_l(l_o))]))     -- B rows only
#   (concat replaced by two accumulated dots on row-sliced weight refs)
# ----------------------------------------------------------------------------
def _v_r_kernel(head_ref, wl_ref, bl_ref, we_ref, be_ref, out_ref, *, feat_dim):
    F = feat_dim
    f32 = jnp.float32
    vgo = head_ref[:, : 2 * F]                       # [B, 2F]
    l_in = head_ref[:, 2 * F:]                       # [B, 5]
    l_o = jnp.dot(l_in, wl_ref[...], preferred_element_type=f32) + bl_ref[...]
    l_o = jnp.maximum(l_o, 0.0)                      # relu in f32
    acc = jnp.dot(vgo, we_ref[: 2 * F, :], preferred_element_type=f32)
    acc = acc + jnp.dot(l_o.astype(we_ref.dtype), we_ref[2 * F:, :],
                        preferred_element_type=f32)
    out_ref[...] = (acc + be_ref[...]).astype(out_ref.dtype)


# ----------------------------------------------------------------------------
# Kernel 2: v_diff_r = v_embed_diff(cat([v_d, relu(fc_dl(l_d))]))  -- row-tiled
#   Reads a (TILE_R, D) row tile of visual_feats directly; no concat.
# ----------------------------------------------------------------------------
def _v_diff_kernel(x_ref, wdl_ref, bdl_ref, wd_ref, bd_ref, out_ref, *, feat_dim):
    F = feat_dim
    f32 = jnp.float32
    v_d = x_ref[:, 2 * F + 5: 3 * F + 5]             # [TILE_R, F]
    l_in = x_ref[:, 3 * F + 5: 3 * F + 10]           # [TILE_R, 5]
    l_d = jnp.dot(l_in, wdl_ref[...], preferred_element_type=f32) + bdl_ref[...]
    l_d = jnp.maximum(l_d, 0.0)                      # relu in f32
    acc = jnp.dot(v_d, wd_ref[:F, :], preferred_element_type=f32)
    acc = acc + jnp.dot(l_d.astype(wd_ref.dtype), wd_ref[F:, :],
                        preferred_element_type=f32)
    out_ref[...] = (acc + bd_ref[...]).astype(out_ref.dtype)


# ----------------------------------------------------------------------------
# Wrapper
# ----------------------------------------------------------------------------
def _clamp_vmem(nbytes):
    # <= 48 MiB keeps us safely under v7x's 64 MiB physical VMEM; plenty of
    # headroom on v5e/v6e (128 MiB physical).
    return int(min(max(nbytes, 4 << 20), 48 << 20))


@functools.partial(
    jax.jit, static_argnames=("feat_dim", "embd_dim", "tile_r", "compute_dtype")
)
def v_extractor_forward(visual_feats, params, *, feat_dim, embd_dim,
                        tile_r=4096, compute_dtype=jnp.float32):
    B, N, D = visual_feats.shape
    F, E = feat_dim, embd_dim
    assert D == 3 * F + 10, "expected D = 3*feat_dim + 10"
    E_pad = max(128, _round_up(E, 128))          # lane-dense padded embed dim
    cdt = jnp.dtype(compute_dtype)
    in_itemsize = cdt.itemsize

    W_l, b_l = params["fc_l"]                    # [5, E], [1, E]
    W_dl, b_dl = params["fc_dl"]                 # [5, E], [1, E]
    W_e, b_e = params["v_embed"]                 # [2F + E, E], [1, E]
    W_d, b_d = params["v_embed_diff"]            # [F + E, E],  [1, E]

    # Zero-pad so output lane dim is a multiple of 128 (unmasked dense vst).
    # Padded relu columns are exactly 0 (zero W/b cols), padded weight rows are
    # 0, so results match.  Weights in compute_dtype, biases stay f32.
    W_l_p = _pad2(W_l, (5, E_pad), cdt)
    b_l_p = _pad2(b_l, (1, E_pad), jnp.float32)
    W_dl_p = _pad2(W_dl, (5, E_pad), cdt)
    b_dl_p = _pad2(b_dl, (1, E_pad), jnp.float32)
    W_e_p = _pad2(W_e, (2 * F + E_pad, E_pad), cdt)
    b_e_p = _pad2(b_e, (1, E_pad), jnp.float32)
    W_d_p = _pad2(W_d, (F + E_pad, E_pad), cdt)
    b_d_p = _pad2(b_d, (1, E_pad), jnp.float32)

    x = visual_feats.astype(cdt)

    # ---------------- branch 1 (tiny: B rows, single un-gridded call) -------
    head = x[:, 0, : 2 * F + 5]                                  # [B, 2F+5]
    b1_bytes = 2 * (B * (2 * F + 5) * in_itemsize
                    + (2 * F + E_pad) * E_pad * in_itemsize
                    + 7 * E_pad * 4
                    + 3 * B * E_pad * 4) + (4 << 20)
    v_r_pad = pl.pallas_call(
        functools.partial(_v_r_kernel, feat_dim=F),
        out_shape=jax.ShapeDtypeStruct((B, E_pad), jnp.float32),
        compiler_params=pltpu.CompilerParams(
            vmem_limit_bytes=_clamp_vmem(b1_bytes)),
    )(head, W_l_p, b_l_p, W_e_p, b_e_p)

    # ---------------- branch 2 (B*N rows, row-tiled + pipelined) ------------
    R = B * N
    x2d = x.reshape(R, D)                        # contiguous -> free reshape

    # Resident-weight VMEM (single-buffered when pipeline_mode is available).
    weight_bytes = ((5 + F + E_pad) * E_pad) * in_itemsize + 2 * E_pad * 4
    if not _HAS_PIPELINE_MODE:
        weight_bytes *= 2
    # Per-row VMEM: double-buffered input + output tiles plus in-kernel
    # intermediates (l_d, two dot results, column-slice temps).
    per_row_bytes = (2 * D + F + 8) * in_itemsize + 6 * E_pad * 4
    budget_rows = max(8, ((28 << 20) - weight_bytes) // per_row_bytes)

    TILE_R = min(int(tile_r), int(budget_rows), R)
    if TILE_R < R:
        TILE_R = max(8, (TILE_R // 8) * 8)       # sublane-divisible tile
    num_tiles = pl.cdiv(R, TILE_R)               # ragged edge is masked; no pad

    vmem_b2 = _clamp_vmem(TILE_R * per_row_bytes + weight_bytes + (4 << 20))

    # NOTE: "parallel" shards the row axis across TensorCores on multi-TC
    # parts (v7x megacore); it is a no-op on single-TC v5e/v6e.
    v_diff_pad = pl.pallas_call(
        functools.partial(_v_diff_kernel, feat_dim=F),
        out_shape=jax.ShapeDtypeStruct((R, E_pad), jnp.float32),
        grid=(num_tiles,),
        in_specs=[
            pl.BlockSpec((TILE_R, D), lambda r: (r, 0)),   # row tile of input
            _resident_spec((5, E_pad)),                    # W_dl (resident)
            _resident_spec((1, E_pad)),                    # b_dl (resident)
            _resident_spec((F + E_pad, E_pad)),            # W_d  (resident)
            _resident_spec((1, E_pad)),                    # b_d  (resident)
        ],
        out_specs=pl.BlockSpec((TILE_R, E_pad), lambda r: (r, 0)),
        compiler_params=pltpu.CompilerParams(
            dimension_semantics=("parallel",),
            vmem_limit_bytes=vmem_b2,
        ),
    )(x2d, W_dl_p, b_dl_p, W_d_p, b_d_p)

    # When E is a multiple of 128 (typical embed dims) there is no slice at
    # all and the reshape below is free (contiguous).
    v_r = v_r_pad if E == E_pad else v_r_pad[:, :E]
    v_diff = v_diff_pad if E == E_pad else v_diff_pad[:, :E]
    return v_r, v_diff.reshape(B, N, E)


# ----------------------------------------------------------------------------
# Deterministic parameter init (mimics nn.Linear U(-1/sqrt(fan_in), +...))
# ----------------------------------------------------------------------------
def init_params(key, feat_dim, embd_dim):
    F, E = feat_dim, embd_dim

    def linear(k, fan_in, fan_out):
        kw, kb = jax.random.split(k)
        bound = 1.0 / np.sqrt(fan_in)
        W = jax.random.uniform(kw, (fan_in, fan_out), jnp.float32, -bound, bound)
        b = jax.random.uniform(kb, (1, fan_out), jnp.float32, -bound, bound)
        return W, b

    k1, k2, k3, k4 = jax.random.split(key, 4)
    return {
        "fc_l": linear(k1, 5, E),
        "fc_dl": linear(k2, 5, E),
        "v_embed": linear(k3, 2 * F + E, E),
        "v_embed_diff": linear(k4, F + E, E),
    }


# ----------------------------------------------------------------------------
# Pure-JAX reference (mirrors the PyTorch forward) for a sanity check.
# ----------------------------------------------------------------------------
def reference_forward(visual_feats, params, feat_dim):
    F = feat_dim
    W_l, b_l = params["fc_l"]
    W_dl, b_dl = params["fc_dl"]
    W_e, b_e = params["v_embed"]
    W_d, b_d = params["v_embed_diff"]

    v_g = visual_feats[:, 0, :F]
    v_o = visual_feats[:, 0, F:2 * F]
    l_o = visual_feats[:, 0, 2 * F:2 * F + 5] @ W_l + b_l
    v_d = visual_feats[:, :, 2 * F + 5:3 * F + 5]
    l_d = visual_feats[:, :, -5:] @ W_dl + b_dl

    v = jnp.concatenate([v_g, v_o, jax.nn.relu(l_o)], -1)
    v_r_d = jnp.concatenate([v_d, jax.nn.relu(l_d)], -1)
    v_r = v @ W_e + b_e
    v_diff_r = v_r_d @ W_d + b_d
    return v_r, v_diff_r


if __name__ == "__main__":
    FEAT_DIM, EMBD_DIM = 32, 32
    D = 3 * FEAT_DIM + 10

    key = jax.random.PRNGKey(0)
    k_in, k_par, k_in2 = jax.random.split(key, 3)
    params = init_params(k_par, FEAT_DIM, EMBD_DIM)

    # Case 1: evenly divisible grid (R = 16 rows, tile 8 -> 2 pipelined steps).
    B, N = 2, 8
    x1 = jax.random.normal(k_in, (B, N, D), jnp.float32)
    v_r, v_diff_r = v_extractor_forward(
        x1, params, feat_dim=FEAT_DIM, embd_dim=EMBD_DIM, tile_r=8)
    jax.block_until_ready((v_r, v_diff_r))
    ref_v_r, ref_v_diff_r = reference_forward(x1, params, FEAT_DIM)
    assert v_r.shape == (B, EMBD_DIM)
    assert v_diff_r.shape == (B, N, EMBD_DIM)
    np.testing.assert_allclose(np.asarray(v_r), np.asarray(ref_v_r),
                               rtol=1e-4, atol=1e-4)
    np.testing.assert_allclose(np.asarray(v_diff_r), np.asarray(ref_v_diff_r),
                               rtol=1e-4, atol=1e-4)

    # Case 2: ragged cdiv grid (R = 24 rows, tile 16 -> blocks of 16 + 8),
    # exercising the no-pad masked-edge path.
    B2, N2 = 3, 8
    x2 = jax.random.normal(k_in2, (B2, N2, D), jnp.float32)
    v_r2, v_diff_r2 = v_extractor_forward(
        x2, params, feat_dim=FEAT_DIM, embd_dim=EMBD_DIM, tile_r=16)
    jax.block_until_ready((v_r2, v_diff_r2))
    ref_v_r2, ref_v_diff_r2 = reference_forward(x2, params, FEAT_DIM)
    np.testing.assert_allclose(np.asarray(v_r2), np.asarray(ref_v_r2),
                               rtol=1e-4, atol=1e-4)
    np.testing.assert_allclose(np.asarray(v_diff_r2), np.asarray(ref_v_diff_r2),
                               rtol=1e-4, atol=1e-4)

    # Case 3: bf16 streaming (halves HBM read bytes; f32 accumulation) with a
    # correspondingly looser tolerance.
    v_r3, v_diff_r3 = v_extractor_forward(
        x1, params, feat_dim=FEAT_DIM, embd_dim=EMBD_DIM, tile_r=8,
        compute_dtype=jnp.bfloat16)
    jax.block_until_ready((v_r3, v_diff_r3))
    np.testing.assert_allclose(np.asarray(v_r3), np.asarray(ref_v_r),
                               rtol=5e-2, atol=5e-2)
    np.testing.assert_allclose(np.asarray(v_diff_r3), np.asarray(ref_v_diff_r),
                               rtol=5e-2, atol=5e-2)

    print("KERNEL_OK")
</pallas_src>

<mosaic_0001>
module attributes {stable_mosaic.version = 11 : i64} {
  func.func @_v_r_kernel(%arg0: memref<2x69xf32, #tpu.memory_space<vmem>>, %arg1: memref<5x128xf32, #tpu.memory_space<vmem>>, %arg2: memref<1x128xf32, #tpu.memory_space<vmem>>, %arg3: memref<192x128xf32, #tpu.memory_space<vmem>>, %arg4: memref<1x128xf32, #tpu.memory_space<vmem>>, %arg5: memref<2x128xf32, #tpu.memory_space<vmem>>) attributes {dimension_semantics = [], scalar_prefetch = 0 : i64, scratch_operands = 0 : i64, tpu.core_type = #tpu.core_type<tc>} {
    %c0 = arith.constant 0 : index
    %c0_0 = arith.constant 0 : index
    %0 = vector.load %arg0[%c0, %c0_0] : memref<2x69xf32, #tpu.memory_space<vmem>>, vector<2x64xf32>
    %c0_1 = arith.constant 0 : index
    %c64 = arith.constant 64 : index
    %1 = vector.load %arg0[%c0_1, %c64] : memref<2x69xf32, #tpu.memory_space<vmem>>, vector<2x5xf32>
    %c0_2 = arith.constant 0 : index
    %c0_3 = arith.constant 0 : index
    %2 = vector.load %arg1[%c0_2, %c0_3] : memref<5x128xf32, #tpu.memory_space<vmem>>, vector<5x128xf32>
    %cst = arith.constant dense<0.000000e+00> : vector<2x128xf32>
    %3 = tpu.matmul %1, %2, %cst {dimension_numbers = #tpu.dot_dimension_numbers<[1], [0], [0], [1], [0, 0, 1, 1], [], []>} : vector<2x5xf32>, vector<5x128xf32>, vector<2x128xf32> -> vector<2x128xf32>
    %c0_4 = arith.constant 0 : index
    %c0_5 = arith.constant 0 : index
    %4 = vector.load %arg2[%c0_4, %c0_5] : memref<1x128xf32, #tpu.memory_space<vmem>>, vector<1x128xf32>
    %5 = vector.broadcast %4 : vector<1x128xf32> to vector<2x128xf32>
    %6 = arith.addf %3, %5 : vector<2x128xf32>
    %cst_6 = arith.constant 0.000000e+00 : f32
    %7 = vector.broadcast %cst_6 : f32 to vector<2x128xf32>
    %8 = arith.maximumf %6, %7 : vector<2x128xf32>
    %c0_7 = arith.constant 0 : index
    %c0_8 = arith.constant 0 : index
    %9 = vector.load %arg3[%c0_7, %c0_8] : memref<192x128xf32, #tpu.memory_space<vmem>>, vector<64x128xf32>
    %cst_9 = arith.constant dense<0.000000e+00> : vector<2x128xf32>
    %10 = tpu.matmul %0, %9, %cst_9 {dimension_numbers = #tpu.dot_dimension_numbers<[1], [0], [0], [1], [0, 0, 1, 1], [], []>} : vector<2x64xf32>, vector<64x128xf32>, vector<2x128xf32> -> vector<2x128xf32>
    %c64_10 = arith.constant 64 : index
    %c0_11 = arith.constant 0 : index
    %11 = vector.load %arg3[%c64_10, %c0_11] : memref<192x128xf32, #tpu.memory_space<vmem>>, vector<128x128xf32>
    %cst_12 = arith.constant dense<0.000000e+00> : vector<2x128xf32>
    %12 = tpu.matmul %8, %11, %cst_12 {dimension_numbers = #tpu.dot_dimension_numbers<[1], [0], [0], [1], [0, 0, 1, 1], [], []>} : vector<2x128xf32>, vector<128x128xf32>, vector<2x128xf32> -> vector<2x128xf32>
    %13 = arith.addf %10, %12 : vector<2x128xf32>
    %c0_13 = arith.constant 0 : index
    %c0_14 = arith.constant 0 : index
    %14 = vector.load %arg4[%c0_13, %c0_14] : memref<1x128xf32, #tpu.memory_space<vmem>>, vector<1x128xf32>
    %15 = vector.broadcast %14 : vector<1x128xf32> to vector<2x128xf32>
    %16 = arith.addf %13, %15 : vector<2x128xf32>
    %c0_15 = arith.constant 0 : index
    %c0_16 = arith.constant 0 : index
    %17 = vector.load %arg5[%c0_15, %c0_16] : memref<2x128xf32, #tpu.memory_space<vmem>>, vector<2x128xf32>
    tpu.vector_store %arg5[%c0_15, %c0_16], %16 {strides = array<i32>} : memref<2x128xf32, #tpu.memory_space<vmem>>, vector<2x128xf32>,
    return
  }
}

module attributes {stable_mosaic.version = 11 : i64} {
  func.func @_v_diff_kernel(%arg0: i32, %arg1: memref<8x106xf32, #tpu.memory_space<vmem>>, %arg2: memref<5x128xf32, #tpu.memory_space<vmem>>, %arg3: memref<1x128xf32, #tpu.memory_space<vmem>>, %arg4: memref<160x128xf32, #tpu.memory_space<vmem>>, %arg5: memref<1x128xf32, #tpu.memory_space<vmem>>, %arg6: memref<8x128xf32, #tpu.memory_space<vmem>>) attributes {dimension_semantics = [#tpu.dimension_semantics<parallel>], iteration_bounds = array<i64: 2>, scalar_prefetch = 0 : i64, scratch_operands = 0 : i64, tpu.core_type = #tpu.core_type<tc>, window_params = [{transform_indices = @transform_0, window_bounds = array<i64: 8, 106>}, {pipeline_mode = #tpu.pipeline_mode<synchronous>, transform_indices = @transform_1, window_bounds = array<i64: 5, 128>}, {pipeline_mode = #tpu.pipeline_mode<synchronous>, transform_indices = @transform_2, window_bounds = array<i64: 1, 128>}, {pipeline_mode = #tpu.pipeline_mode<synchronous>, transform_indices = @transform_3, window_bounds = array<i64: 160, 128>}, {pipeline_mode = #tpu.pipeline_mode<synchronous>, transform_indices = @transform_4, window_bounds = array<i64: 1, 128>}, {transform_indices = @transform_5, window_bounds = array<i64: 8, 128>}]} {
    %c0 = arith.constant 0 : index
    %c69 = arith.constant 69 : index
    %0 = vector.load %arg1[%c0, %c69] : memref<8x106xf32, #tpu.memory_space<vmem>>, vector<8x32xf32>
    %c0_0 = arith.constant 0 : index
    %c101 = arith.constant 101 : index
    %1 = vector.load %arg1[%c0_0, %c101] : memref<8x106xf32, #tpu.memory_space<vmem>>, vector<8x5xf32>
    %c0_1 = arith.constant 0 : index
    %c0_2 = arith.constant 0 : index
    %2 = vector.load %arg2[%c0_1, %c0_2] : memref<5x128xf32, #tpu.memory_space<vmem>>, vector<5x128xf32>
    %cst = arith.constant dense<0.000000e+00> : vector<8x128xf32>
    %3 = tpu.matmul %1, %2, %cst {dimension_numbers = #tpu.dot_dimension_numbers<[1], [0], [0], [1], [0, 0, 1, 1], [], []>} : vector<8x5xf32>, vector<5x128xf32>, vector<8x128xf32> -> vector<8x128xf32>
    %c0_3 = arith.constant 0 : index
    %c0_4 = arith.constant 0 : index
    %4 = vector.load %arg3[%c0_3, %c0_4] : memref<1x128xf32, #tpu.memory_space<vmem>>, vector<1x128xf32>
    %5 = vector.broadcast %4 : vector<1x128xf32> to vector<8x128xf32>
    %6 = arith.addf %3, %5 : vector<8x128xf32>
    %cst_5 = arith.constant 0.000000e+00 : f32
    %7 = vector.broadcast %cst_5 : f32 to vector<8x128xf32>
    %8 = arith.maximumf %6, %7 : vector<8x128xf32>
    %c0_6 = arith.constant 0 : index
    %c0_7 = arith.constant 0 : index
    %9 = vector.load %arg4[%c0_6, %c0_7] : memref<160x128xf32, #tpu.memory_space<vmem>>, vector<32x128xf32>
    %cst_8 = arith.constant dense<0.000000e+00> : vector<8x128xf32>
    %10 = tpu.matmul %0, %9, %cst_8 {dimension_numbers = #tpu.dot_dimension_numbers<[1], [0], [0], [1], [0, 0, 1, 1], [], []>} : vector<8x32xf32>, vector<32x128xf32>, vector<8x128xf32> -> vector<8x128xf32>
    %c32 = arith.constant 32 : index
    %c0_9 = arith.constant 0 : index
    %11 = vector.load %arg4[%c32, %c0_9] : memref<160x128xf32, #tpu.memory_space<vmem>>, vector<128x128xf32>
    %cst_10 = arith.constant dense<0.000000e+00> : vector<8x128xf32>
    %12 = tpu.matmul %8, %11, %cst_10 {dimension_numbers = #tpu.dot_dimension_numbers<[1], [0], [0], [1], [0, 0, 1, 1], [], []>} : vector<8x128xf32>, vector<128x128xf32>, vector<8x128xf32> -> vector<8x128xf32>
    %13 = arith.addf %10, %12 : vector<8x128xf32>
    %c0_11 = arith.constant 0 : index
    %c0_12 = arith.constant 0 : index
    %14 = vector.load %arg5[%c0_11, %c0_12] : memref<1x128xf32, #tpu.memory_space<vmem>>, vector<1x128xf32>
    %15 = vector.broadcast %14 : vector<1x128xf32> to vector<8x128xf32>
    %16 = arith.addf %13, %15 : vector<8x128xf32>
    %c0_13 = arith.constant 0 : index
    %c0_14 = arith.constant 0 : index
    %17 = vector.load %arg6[%c0_13, %c0_14] : memref<8x128xf32, #tpu.memory_space<vmem>>, vector<8x128xf32>
    tpu.vector_store %arg6[%c0_13, %c0_14], %16 {strides = array<i32>} : memref<8x128xf32, #tpu.memory_space<vmem>>, vector<8x128xf32>,
    return
  }
  func.func @transform_0(%arg0: i32) -> (i32, i32) {
    %c0_i32 = arith.constant 0 : i32
    %c0_i32_0 = arith.constant 0 : i32
    return %arg0, %c0_i32 : i32, i32
  }
  func.func @transform_1(%arg0: i32) -> (i32, i32) {
    %c0_i32 = arith.constant 0 : i32
    %c0_i32_0 = arith.constant 0 : i32
    %c0_i32_1 = arith.constant 0 : i32
    return %c0_i32, %c0_i32_0 : i32, i32
  }
  func.func @transform_2(%arg0: i32) -> (i32, i32) {
    %c0_i32 = arith.constant 0 : i32
    %c0_i32_0 = arith.constant 0 : i32
    %c0_i32_1 = arith.constant 0 : i32
    return %c0_i32, %c0_i32_0 : i32, i32
  }
  func.func @transform_3(%arg0: i32) -> (i32, i32) {
    %c0_i32 = arith.constant 0 : i32
    %c0_i32_0 = arith.constant 0 : i32
    %c0_i32_1 = arith.constant 0 : i32
    return %c0_i32, %c0_i32_0 : i32, i32
  }
  func.func @transform_4(%arg0: i32) -> (i32, i32) {
    %c0_i32 = arith.constant 0 : i32
    %c0_i32_0 = arith.constant 0 : i32
    %c0_i32_1 = arith.constant 0 : i32
    return %c0_i32, %c0_i32_0 : i32, i32
  }
  func.func @transform_5(%arg0: i32) -> (i32, i32) {
    %c0_i32 = arith.constant 0 : i32
    %c0_i32_0 = arith.constant 0 : i32
    return %arg0, %c0_i32 : i32, i32
  }
}

</mosaic_0001>

<bundles_post_ra>
// kernel: v_extractor_forward.2
= control target key start
LH: loop header
LB: loop body
LE: loop exit
PB: predicated region body
PF: predicated region fallthrough
CT: control target
= control target key end

     0   :  { %s458_s22 = smov 64   ;;  %v459_v2 = vmov 0.0   ;;  %vm36_vm0 = vcmask 1044480   ;;  %vm460_vm1 = vmmov 0   ;;  %v461_v8 = vmov 0.0|0.0   ;;  %s596_s0 = inlined_call_operand.vmem [shape: f32[2,69], index: 0, kind: input, shape index: {}]   ;;  %s597_s1 = inlined_call_operand.vmem [shape: f32[5,128], index: 1, kind: input, shape index: {}]   ;;  %s598_s2 = inlined_call_operand.vmem [shape: f32[1,128], index: 2, kind: input, shape index: {}]   ;;  %s599_s3 = inlined_call_operand.vmem [shape: f32[192,128], index: 3, kind: input, shape index: {}]   ;;  %s600_s4 = inlined_call_operand.vmem [shape: f32[1,128], index: 4, kind: input, shape index: {}]   ;;  %s601_s5 = inlined_call_operand.hbm [shape: f32[2,128], index: 5, kind: output, shape index: {}]  }
   0x1   :  { %v496_v0 = vld [vmem:[%s596_s0] sm:$0x3]  ;;  %334 = vmatprep.subr.mxu0 %v459_v2  ;;  %v120_v4 = vld [vmem:[%s599_s3 + $0x48] sm:$0xff]  ;;  %336 = vmatprep.mubr.msk.f32.mxu0 %vm460_vm1, %v459_v2  ;;  %v121_v6 = vld [vmem:[%s599_s3 + $0x50] sm:$0xff] }
   0x2   :  { %v22_v1 = vld [vmem:[%s597_s1] sm:$0x1f]  ;;  %31 = vrot.lane.b32.xlu0 %v496_v0, %s458_s22  ;;  %v122_v7 = vld [vmem:[%s599_s3 + $0x58] sm:$0xff]  ;;  %393 = vmatprep.subr.bf16.mxu1 %v461_v8  ;;  %v124_v11 = vld [vmem:[%s599_s3 + $0x68] sm:$0xff] }
   0x3   :  { %v119_v3 = vld [vmem:[%s599_s3 + $0x40] sm:$0xff]  ;;  %335 = vmatpush3.msk.msra.mxu0 %vm36_vm0, %v22_v1  ;;  %v397_v9 = vpack.c.bf16 %v122_v7, %v121_v6  ;;  %371 = vmatprep.mubr.msk.f32.mxu1 %vm460_vm1, %v459_v2 }
   0x4   :  { %v394_v5 = vpack.c.bf16 %v120_v4, %v119_v3  ;;  %417 = vmatprep.subr.bf16.mxu0 %v461_v8  ;;  %v123_v10 = vld [vmem:[%s599_s3 + $0x60] sm:$0xff] }
   0x5   :  { %v400_v12 = vpack.c.bf16 %v124_v11, %v123_v10 }
   0x6   :  { %395 = vmatpush3.bf16.msra.mxu1 %v394_v5 }
   0x7   :  { %396 = vmatprep.subr.bf16.mxu1 %v461_v8 }
   0xa   :  { %398 = vmatpush3.bf16.msra.mxu1 %v397_v9 }
   0xb   :  { %10 = vsyncpa [#allocation3], 0  ;;  %399 = vmatprep.subr.bf16.mxu1 %v461_v8  ;;  %v125_v13 = vld [vmem:[%s599_s3 + $0x70] sm:$0xff]  ;;  %v126_v14 = vld [vmem:[%s599_s3 + $0x78] sm:$0xff]  ;;  %vm33_vm2 = vcmask 39936   ;;  %vm205_vm3 = vcmask 523264  }
   0xc   :  { %v403_v15 = vpack.c.bf16 %v126_v14, %v125_v13  ;;  %v127_v16 = vld [vmem:[%s599_s3 + $0x80] sm:$0xff]  ;;  %v128_v17 = vld [vmem:[%s599_s3 + $0x88] sm:$0xff]  ;;  %v129_v19 = vld [vmem:[%s599_s3 + $0x90] sm:$0xff]  ;;  %s462_s20 = smov [#allocation2]  }
   0xd   :  { %v406_v18 = vpack.c.bf16 %v128_v17, %v127_v16  ;;  %v130_v20 = vld [vmem:[%s599_s3 + $0x98] sm:$0xff]  ;;  %v131_v22 = vld [vmem:[%s599_s3 + $0xa0] sm:$0xff]  ;;  %v132_v23 = vld [vmem:[%s599_s3 + $0xa8] sm:$0xff]  ;;  %s293_s21 = sshll.u32 %s462_s20, 4  ;;  %s294_s21 = int_to_ptr.vmem [resolvable:$true] %s293_s21 }
   0xe   :  { %401 = vmatpush3.bf16.msra.mxu1 %v400_v12  ;;  %v409_v21 = vpack.c.bf16 %v130_v20, %v129_v19  ;;  %v412_v24 = vpack.c.bf16 %v132_v23, %v131_v22  ;;  %v111_v25 = vld [vmem:[%s599_s3] sm:$0xff]  ;;  %v112_v26 = vld [vmem:[%s599_s3 + $0x8] sm:$0xff]  ;;  %v113_v28 = vld [vmem:[%s599_s3 + $0x10] sm:$0xff]  ;;  %p439_p1 = scmp.lt.s32.totalorder %s294_s21, %s294_s21 }
   0xf   :  { %402 = vmatprep.subr.bf16.mxu1 %v461_v8  ;;  %v418_v27 = vpack.c.bf16 %v112_v26, %v111_v25  ;;  %v114_v29 = vld [vmem:[%s599_s3 + $0x18] sm:$0xff]  ;;  %v115_v32 = vld [vmem:[%s599_s3 + $0x20] sm:$0xff]  ;;  %v116_v33 = vld [vmem:[%s599_s3 + $0x28] sm:$0xff] }
  0x10   :  { %v421_v31 = vpack.c.bf16 %v114_v29, %v113_v28  ;;  %v424_v34 = vpack.c.bf16 %v116_v33, %v115_v32  ;;  %v117_v35 = vld [vmem:[%s599_s3 + $0x30] sm:$0xff]  ;;  %v118_v36 = vld [vmem:[%s599_s3 + $0x38] sm:$0xff]  ;;  %v301_v41 = vld [vmem:[%s598_s2] ss:$0 sm:$0xff]  ;;  %s434_s2 = scalar_lea.vmem %s294_s21, 32 }
  0x11   :  { %v427_v37 = vpack.c.bf16 %v118_v36, %v117_v35  ;;  %v133_v38 = vld [vmem:[%s599_s3 + $0xb0] sm:$0xff]  ;;  %v134_v39 = vld [vmem:[%s599_s3 + $0xb8] sm:$0xff]  ;;  %v305_v49 = vld [vmem:[%s600_s4] ss:$0 sm:$0xff]  ;;  %p435_p0 = scmp.ne.s32.totalorder %s294_s21, %s434_s2  ;;  %p440_p2 = scmp.lt.s32.totalorder %s434_s2, %s434_s2 }
  0x12   :  { %404 = vmatpush3.bf16.msra.mxu1 %v403_v15  ;;  %v415_v40 = vpack.c.bf16 %v134_v39, %v133_v38 }
  0x13   :  { %405 = vmatprep.subr.bf16.mxu1 %v461_v8  ;;  %p441_p3 = por %p440_p2, %p439_p1 }
  0x15   :  { %p442_p4 = pnand %p441_p3, %p435_p0 }
  0x16   :  { %407 = vmatpush3.bf16.msra.mxu1 %v406_v18 }
  0x17   :  { %408 = vmatprep.subr.bf16.mxu1 %v461_v8 }
  0x1a   :  { %410 = vmatpush3.bf16.msra.mxu1 %v409_v21 }
  0x1b   :  { %411 = vmatprep.subr.bf16.mxu1 %v461_v8 }
  0x1e   :  { %413 = vmatpush3.bf16.msra.mxu1 %v412_v24 }
  0x1f   :  { %414 = vmatprep.subr.bf16.mxu1 %v461_v8 }
  0x22   :  { %416 = vmatpush3.bf16.msra.mxu1 %v415_v40 }
  0x74   :  { %v32_v30 = vpop.permute.xlu0 %31 }
  0x75   :  { %337 = vmatmul.mubr.msk.f32.vlgmr.msra.gmra.mrb[0].mxu0 %vm33_vm2, %v32_v30 }
  0x76   :  { %419 = vmatpush3.bf16.msra.mxu0 %v418_v27  ;;  %390 = vmatprep.mubr.msk.f32.mxu0 %vm460_vm1, %v459_v2 }
  0x77   :  { %420 = vmatprep.subr.bf16.mxu0 %v461_v8 }
  0x7a   :  { %422 = vmatpush3.bf16.msra.mxu0 %v421_v31 }
  0x7b   :  { %423 = vmatprep.subr.bf16.mxu0 %v461_v8 }
  0x7e   :  { %425 = vmatpush3.bf16.msra.mxu0 %v424_v34 }
  0x7f   :  { %426 = vmatprep.subr.bf16.mxu0 %v461_v8 }
  0x82   :  { %428 = vmatpush3.bf16.msra.mxu0 %v427_v37 }
  0x85   :  { %391 = vmatmul.mubr.msk.f32.vlgmr.msra.gmra.mrb[2].mxu0 %vm205_vm3, %v496_v0 }
 0x148   :  { %v106_v42 = vpop.f32.mrb[0].mxu0 }
 0x149   :  { %v107_v43 = vadd.f32 %v301_v41, %v106_v42  ;;  %v338_v44 = vpop.f32.mrb[1].mxu0 }
 0x14b   :  { %v110_v45 = vmax.f32 %v107_v43, 0.0 }
 0x14d   :  { %372 = vmatmul.mubr.f32.vlgmr.msra.gmra.mrb[0].mxu1 %v110_v45 }
 0x158   :  { %v274_v46 = vpop.f32.mrb[2].mxu0 }
 0x159   :  { %v392_v47 = vpop.f32.mrb[3].mxu0 }
 0x220   :  { %v201_v48 = vpop.f32.mrb[0].mxu1 }
 0x221   :  { %v275_v50 = vadd.f32 %v274_v46, %v201_v48  ;;  %v373_v51 = vpop.f32.mrb[1].mxu1 }
 0x223   :  { %v285_v52 = vadd.f32 %v305_v49, %v275_v50 }
 0x225   :  { %286 = vst [vmem:[#allocation2] sm:$0x3] %v285_v52 }
 0x226   :  { %445 = shalt.err (!%p442_p4)
}
 0x227   :  { %s446_s24 = scalar_lea.hbm %s601_s5, 32 }
 0x228   :  { %p447_p5 = scmp.ne.s32.totalorder %s601_s5, %s446_s24  ;;  %p450_p6 = scmp.lt.u32.totalorder %s446_s24, %s601_s5 }
 0x22a   :  { %p452_p7 = pnand %p450_p6, %p447_p5 }
 0x22c   :  { %455 = shalt.err (!%p452_p7)
}
 0x22d   :  { %296 = dma.vmem_to_hbm [thread:$0]  %s294_s21, 32, %s601_s5, [#allocation3]  }
 0x22e   :  { %456 = dma.done.wait [#allocation3], 32  }
 0x22f   :  { %457 = vsyncadd [#allocation3], 4294967264 }
 0x230   :  { %300 = vsyncpa [#allocation3], 1 }

// kernel: v_extractor_forward.3
= control target key start
LH: loop header
LB: loop body
LE: loop exit
PB: predicated region body
PF: predicated region fallthrough
CT: control target
= control target key end

     0   :  { %s712_s18 = smov 0   ;;  %s808_s0 = inlined_call_operand.vmem [shape: f32[16,106], index: 0, kind: input, shape index: {}]   ;;  %s809_s1 = inlined_call_operand.vmem [shape: f32[5,128], index: 1, kind: input, shape index: {}]   ;;  %s810_s2 = inlined_call_operand.vmem [shape: f32[1,128], index: 2, kind: input, shape index: {}]   ;;  %s811_s3 = inlined_call_operand.vmem [shape: f32[160,128], index: 3, kind: input, shape index: {}]   ;;  %s812_s4 = inlined_call_operand.vmem [shape: f32[1,128], index: 4, kind: input, shape index: {}]   ;;  %s813_s5 = inlined_call_operand.vmem [shape: f32[16,128], index: 5, kind: output, shape index: {}]  }
   0x1 LB: > { %s537_s19 = sadd.s32 4294967295, %s675_s18   ;;  %p541_p0 = scmp.ge.s32.totalorder %s675_s18, 1  ;;  %s675_s18 = sphi %s712_s18, %s15_s18  }
   0x2   : > { %p186_p1 = scmp.lt.s32.totalorder %s675_s18, 3 }
   0x4   : > { %p187_p2 = pnand %p541_p0, %p186_p1 }
   0x5   : > { %p212_p3 = scmp.lt.s32.totalorder (!%p187_p2), %s537_s19, 1  ;;  %v221_v0 = vld [vmem:[%s809_s1] sm:$0x1f] (!%p187_p2)  ;;  %vm235_vm0 = vcmask (!%p187_p2), 1044480   ;;  %v677_v1 = vmov (!%p187_p2), 0.0   ;;  %v315_v3 = vld [vmem:[%s811_s3 + $0x28] sm:$0xff] (!%p187_p2) }
   0x6   : > { %190 = sbr.rel (%p187_p2) target bundleno = 565 (0x235), region = 40  ;;  %575 = vmatprep.subr.mxu0 (!%p187_p2), %v677_v1  ;;  %v314_v2 = vld [vmem:[%s811_s3 + $0x20] sm:$0xff] (!%p187_p2)  ;;  %vm678_vm1 = vmmov (!%p187_p2), 0   ;;  %v316_v5 = vld [vmem:[%s811_s3 + $0x30] sm:$0xff] (!%p187_p2)  ;;  %v317_v6 = vld [vmem:[%s811_s3 + $0x38] sm:$0xff] (!%p187_p2)  ;;  %v679_v7 = vmov (!%p187_p2), 0.0|0.0  }
   0x7   : > { %576 = vmatpush3.msk.msra.mxu0 (!%p187_p2), %vm235_vm0, %v221_v0  ;;  %577 = vmatprep.mubr.msk.f32.mxu0 (!%p187_p2), %vm678_vm1, %v677_v1  ;;  %v627_v4 = vpack.c.bf16 (!%p187_p2), %v315_v3, %v314_v2  ;;  %v630_v8 = vpack.c.bf16 (!%p187_p2), %v317_v6, %v316_v5  ;;  %v318_v9 = vld [vmem:[%s811_s3 + $0x40] sm:$0xff] (!%p187_p2)  ;;  %v319_v10 = vld [vmem:[%s811_s3 + $0x48] sm:$0xff] (!%p187_p2)  ;;  %s680_s13 = smov (!%p187_p2), 27   ;;  %v320_v13 = vld [vmem:[%s811_s3 + $0x50] sm:$0xff] (!%p187_p2)  ;;  %s681_s20 = smov (!%p187_p2), 59   ;;  %vm232_vm2 = vcmask (!%p187_p2), 39936  }
   0x8   : > { %626 = vmatprep.subr.bf16.mxu1 (!%p187_p2), %v679_v7  ;;  %650 = vmatprep.subr.bf16.mxu0 (!%p187_p2), %v679_v7  ;;  %v633_v12 = vpack.c.bf16 (!%p187_p2), %v319_v10, %v318_v9  ;;  %v321_v14 = vld [vmem:[%s811_s3 + $0x58] sm:$0xff] (!%p187_p2)  ;;  %v322_v16 = vld [vmem:[%s811_s3 + $0x60] sm:$0xff] (!%p187_p2)  ;;  %v323_v17 = vld [vmem:[%s811_s3 + $0x68] sm:$0xff] (!%p187_p2)  ;;  %vm402_vm3 = vcmask (!%p187_p2), 261120  }
   0x9   : > { %628 = vmatpush3.bf16.msra.mxu1 (!%p187_p2), %v627_v4  ;;  %612 = vmatprep.mubr.msk.f32.mxu1 (!%p187_p2), %vm678_vm1, %v677_v1  ;;  %v636_v15 = vpack.c.bf16 (!%p187_p2), %v321_v14, %v320_v13  ;;  %v639_v18 = vpack.c.bf16 (!%p187_p2), %v323_v17, %v322_v16  ;;  %v324_v19 = vld [vmem:[%s811_s3 + $0x70] sm:$0xff] (!%p187_p2)  ;;  %v325_v20 = vld [vmem:[%s811_s3 + $0x78] sm:$0xff] (!%p187_p2)  ;;  %v326_v22 = vld [vmem:[%s811_s3 + $0x80] sm:$0xff] (!%p187_p2) }
   0xa   : > { %629 = vmatprep.subr.bf16.mxu1 (!%p187_p2), %v679_v7  ;;  %v642_v21 = vpack.c.bf16 (!%p187_p2), %v325_v20, %v324_v19  ;;  %v327_v23 = vld [vmem:[%s811_s3 + $0x88] sm:$0xff] (!%p187_p2)  ;;  %v310_v25 = vld [vmem:[%s811_s3] sm:$0xff] (!%p187_p2)  ;;  %v312_v29 = vld [vmem:[%s811_s3 + $0x10] sm:$0xff] (!%p187_p2) }
   0xb   : > { %v645_v24 = vpack.c.bf16 (!%p187_p2), %v327_v23, %v326_v22  ;;  %v311_v26 = vld [vmem:[%s811_s3 + $0x8] sm:$0xff] (!%p187_p2)  ;;  %v313_v30 = vld [vmem:[%s811_s3 + $0x18] sm:$0xff] (!%p187_p2)  ;;  %v328_v32 = vld [vmem:[%s811_s3 + $0x90] sm:$0xff] (!%p187_p2) }
   0xc   : > { %v651_v27 = vpack.c.bf16 (!%p187_p2), %v311_v26, %v310_v25  ;;  %v654_v31 = vpack.c.bf16 (!%p187_p2), %v313_v30, %v312_v29  ;;  %v329_v33 = vld [vmem:[%s811_s3 + $0x98] sm:$0xff] (!%p187_p2)  ;;  %v544_v36 = vld [vmem:[%s810_s2] ss:$0 sm:$0xff] (!%p187_p2) }
   0xd   : > { %s815_s19 = smov (!%p212_p3, %s537_s19), 1  ;;  %631 = vmatpush3.bf16.msra.mxu1 %v630_v8  ;;  %v648_v34 = vpack.c.bf16 %v329_v33, %v328_v32  ;;  %v548_v44 = vld [vmem:[%s812_s4] ss:$0 sm:$0xff] }
   0xe   : > { %s542_s30 = sshll.u32 %s815_s19, 3  ;;  %632 = vmatprep.subr.bf16.mxu1 %v679_v7 }
   0xf   : > { %s215_s8 = scalar_lea.vmem %s808_s0, %s542_s30  ;;  %s219_s29 = scalar_lea.vmem %s813_s5, %s542_s30 }
  0x10   : > { %v220_v11 = vld [vmem:[%s215_s8] sm:$0xff] }
  0x11   : > { %230 = vrot.lane.b32.xlu0 %v220_v11, %s680_s13  ;;  %634 = vmatpush3.bf16.msra.mxu1 %v633_v12 }
  0x12   : > { %635 = vmatprep.subr.bf16.mxu1 %v679_v7 }
  0x15   : > { %400 = vrot.lane.b32.xlu0 %v220_v11, %s681_s20  ;;  %637 = vmatpush3.bf16.msra.mxu1 %v636_v15 }
  0x16   : > { %638 = vmatprep.subr.bf16.mxu1 %v679_v7 }
  0x19   : > { %640 = vmatpush3.bf16.msra.mxu1 %v639_v18 }
  0x1a   : > { %641 = vmatprep.subr.bf16.mxu1 %v679_v7 }
  0x1d   : > { %643 = vmatpush3.bf16.msra.mxu1 %v642_v21 }
  0x1e   : > { %644 = vmatprep.subr.bf16.mxu1 %v679_v7 }
  0x21   : > { %646 = vmatpush3.bf16.msra.mxu1 %v645_v24 }
  0x22   : > { %647 = vmatprep.subr.bf16.mxu1 %v679_v7 }
  0x25   : > { %649 = vmatpush3.bf16.msra.mxu1 %v648_v34 }
  0x83   : > { %v231_v28 = vpop.permute.xlu0 %230 }
  0x84   : > { %578 = vmatmul.mubr.msk.f32.vlgmr.msra.gmra.mrb[0].mxu0 %vm232_vm2, %v231_v28 }
  0x85   : > { %652 = vmatpush3.bf16.msra.mxu0 %v651_v27  ;;  %623 = vmatprep.mubr.msk.f32.mxu0 %vm678_vm1, %v677_v1 }
  0x86   : > { %653 = vmatprep.subr.bf16.mxu0 %v679_v7 }
  0x87   : > { %v401_v35 = vpop.permute.xlu0 %400 }
  0x89   : > { %655 = vmatpush3.bf16.msra.mxu0 %v654_v31 }
  0x8c   : > { %624 = vmatmul.mubr.msk.f32.vlgmr.msra.gmra.mrb[2].mxu0 %vm402_vm3, %v401_v35 }
 0x157   : > { %v305_v37 = vpop.f32.mrb[0].mxu0 }
 0x158   : > { %v306_v38 = vadd.f32 %v544_v36, %v305_v37  ;;  %v579_v39 = vpop.f32.mrb[1].mxu0 }
 0x15a   : > { %v309_v40 = vmax.f32 %v306_v38, 0.0 }
 0x15c   : > { %613 = vmatmul.mubr.f32.vlgmr.msra.gmra.mrb[0].mxu1 %v309_v40 }
 0x15f   : > { %v471_v41 = vpop.f32.mrb[2].mxu0 }
 0x160   : > { %v625_v42 = vpop.f32.mrb[3].mxu0 }
 0x22f   : > { %v396_v43 = vpop.f32.mrb[0].mxu1 }
 0x230   : > { %v472_v45 = vadd.f32 %v471_v41, %v396_v43  ;;  %v614_v46 = vpop.f32.mrb[1].mxu1 }
 0x232   : > { %v482_v47 = vadd.f32 %v548_v44, %v472_v45 }
 0x234   : > { %483 = vst [vmem:[%s219_s29] sm:$0xff] %v482_v47 }
 0x235 PF: > { %s15_s18 = sadd.s32 1, %s675_s18  }
 0x236   : > { %p12_p4 = scmp.ge.s32.totalorder %s15_s18, 4  }
 0x238   :  { %14 = sbr.rel (!%p12_p4) target bundleno = 1 (0x1), region = 70 }

</bundles_post_ra>
